<compile_context>
chip_gen: v6e
topology: v6e:2x2x1
jax: 0.10.0
libtpu: 0.0.40
codegen_flags: <defaults>
</compile_context>

<pallas_src>
import functools

import jax
import jax.numpy as jnp
from jax.experimental import pallas as pl
from jax.experimental.pallas import tpu as pltpu


def _round_up(a, b):
    return (a + b - 1) // b * b


def pooling_kernel(x_ref, len_ref, wa_ref, ba_ref, wf_ref, bf_ref, o_ref):
    # x_ref:   (tb, S, C_in)  row-tile of the (padded) batch
    # len_ref: (tb, 1)        valid sequence length per row, float32
    # wa_ref:  (1, C_in)      attn_layer weight (Linear(C_in, 1), same layout as torch)
    # ba_ref:  (1, 1)         attn_layer bias
    # wf_ref:  (C_in, C_out)  fc weight, stored (in, out) so pooled @ W works directly
    # bf_ref:  (1, C_out)     fc bias
    x = x_ref[...]                                                  # (tb, S, C)
    tb, S, _ = x.shape

    # Attention gate: out_features == 1 -> VPU multiply + lane reduce (not the MXU).
    logits = jnp.sum(x * wa_ref[...][None, :, :], axis=-1) + ba_ref[...]   # (tb, S)
    attn = 1.0 / (1.0 + jnp.exp(-logits))                           # sigmoid on EUP

    # Padding mask + mean scale, built in-kernel from the per-row length.
    lens = len_ref[...]                                             # (tb, 1)
    pos = jax.lax.broadcasted_iota(jnp.int32, (tb, S), 1).astype(jnp.float32)
    valid = (pos < lens).astype(jnp.float32)                        # (tb, S)
    w = attn * valid * (1.0 / lens)                                 # (tb, S)

    # Masked weighted mean over the sequence axis (sublane reduce).
    pooled = jnp.sum(x * w[:, :, None], axis=1)                     # (tb, C_in)

    # Final projection on the MXU with f32 accumulation.
    out = jnp.dot(pooled, wf_ref[...], preferred_element_type=jnp.float32) + bf_ref[...]
    o_ref[...] = out.astype(o_ref.dtype)


@functools.partial(jax.jit, static_argnames=("tb",))
def pooling_layer(x, params, lengths=None, tb=128):
    """Pallas forward of PoolingLayer.

    x:       (B, S, C_in) float32
    params:  (wa (1, C_in), ba (1, 1), wf (C_in, C_out), bf (1, C_out))
    lengths: optional (B,) ints/floats of valid sequence lengths
    returns: (B, C_out) float32
    """
    wa, ba, wf, bf = params
    B, S, C_in = x.shape
    C_out = wf.shape[1]

    if lengths is None:
        lens = jnp.full((B,), float(S), jnp.float32)     # mean over full sequence
    else:
        lens = lengths.astype(jnp.float32)

    # Batch row tile: multiple of 8 sublanes; pad the batch instead of asserting.
    tb = max(8, min(int(tb), _round_up(B, 8)))
    tb = _round_up(tb, 8)
    B_pad = _round_up(B, tb)

    if B_pad != B:
        x = jnp.pad(x, ((0, B_pad - B), (0, 0), (0, 0)))
        lens = jnp.pad(lens, (0, B_pad - B), constant_values=float(S))
    lens2 = lens.reshape(B_pad, 1)

    out = pl.pallas_call(
        pooling_kernel,
        out_shape=jax.ShapeDtypeStruct((B_pad, C_out), jnp.float32),
        grid_spec=pltpu.PrefetchScalarGridSpec(
            num_scalar_prefetch=0,
            grid=(B_pad // tb,),
            in_specs=[
                pl.BlockSpec((tb, S, C_in), lambda i: (i, 0, 0)),   # x row tile
                pl.BlockSpec((tb, 1), lambda i: (i, 0)),            # lengths
                pl.BlockSpec((1, C_in), lambda i: (0, 0)),          # attn weight row
                pl.BlockSpec((1, 1), lambda i: (0, 0)),             # attn bias
                pl.BlockSpec((C_in, C_out), lambda i: (0, 0)),      # fc weight (in, out)
                pl.BlockSpec((1, C_out), lambda i: (0, 0)),         # fc bias
            ],
            out_specs=pl.BlockSpec((tb, C_out), lambda i: (i, 0)),  # lane-dense output
        ),
        compiler_params=pltpu.CompilerParams(
            dimension_semantics=("parallel",)),
    )(x, lens2, wa, ba, wf, bf)

    return out[:B]


def init_params(key, in_channels, out_channels):
    """Deterministic synthetic init of the two Linear layers.

    attn weight is stored as a (1, C_in) row (same as torch's Linear(C_in, 1) weight);
    fc weight is stored transposed relative to PyTorch, i.e. (in, out), so the kernel
    can do pooled @ W directly.
    """
    ks = jax.random.split(key, 4)

    def uni(k, shape, fan_in):
        lim = 1.0 / jnp.sqrt(jnp.float32(fan_in))
        return jax.random.uniform(k, shape, jnp.float32, -lim, lim)

    wa = uni(ks[0], (1, in_channels), in_channels)
    ba = uni(ks[1], (1, 1), in_channels)
    wf = uni(ks[2], (in_channels, out_channels), in_channels)
    bf = uni(ks[3], (1, out_channels), in_channels)
    return (wa, ba, wf, bf)


def reference_forward(x, params, lengths=None):
    """Pure-JAX reference matching the PyTorch forward semantics."""
    wa, ba, wf, bf = params
    B, S, _ = x.shape
    logits = jnp.einsum("bsc,c->bs", x, wa[0]) + ba[0, 0]
    weights = jax.nn.sigmoid(logits)[..., None]                       # (B, S, 1)
    if lengths is None:
        pooled = jnp.mean(x * weights, axis=1)
    else:
        mask = (jnp.arange(S)[None, :] < lengths[:, None]).astype(x.dtype)
        pooled = jnp.sum(x * weights * mask[..., None], axis=1)
        pooled = pooled * (1.0 / lengths.astype(x.dtype))[:, None]
    return pooled @ wf + bf


if __name__ == "__main__":
    B, S = 2, 8
    in_channels, out_channels = 16, 32

    key = jax.random.PRNGKey(0)
    k_x, k_p = jax.random.split(key)

    x = jax.random.normal(k_x, (B, S, in_channels), jnp.float32)
    lengths = jnp.array([5, 8], jnp.int32)
    params = init_params(k_p, in_channels, out_channels)

    # lengths path (masked weighted mean)
    out = jax.block_until_ready(pooling_layer(x, params, lengths))
    ref = reference_forward(x, params, lengths)
    assert out.shape == (B, out_channels)
    assert jnp.allclose(out, ref, atol=1e-4, rtol=1e-4)

    # no-lengths path (plain weighted mean)
    out_nl = jax.block_until_ready(pooling_layer(x, params, None))
    ref_nl = reference_forward(x, params, None)
    assert out_nl.shape == (B, out_channels)
    assert jnp.allclose(out_nl, ref_nl, atol=1e-4, rtol=1e-4)

    print("KERNEL_OK")
</pallas_src>

<mosaic_0001>
module attributes {stable_mosaic.version = 11 : i64} {
  func.func @pooling_kernel(%arg0: i32, %arg1: memref<8x8x16xf32, #tpu.memory_space<vmem>>, %arg2: memref<8x1xf32, #tpu.memory_space<vmem>>, %arg3: memref<1x16xf32, #tpu.memory_space<vmem>>, %arg4: memref<1x1xf32, #tpu.memory_space<vmem>>, %arg5: memref<16x32xf32, #tpu.memory_space<vmem>>, %arg6: memref<1x32xf32, #tpu.memory_space<vmem>>, %arg7: memref<8x32xf32, #tpu.memory_space<vmem>>) attributes {dimension_semantics = [#tpu.dimension_semantics<parallel>], iteration_bounds = array<i64: 1>, scalar_prefetch = 0 : i64, scratch_operands = 0 : i64, tpu.core_type = #tpu.core_type<tc>, window_params = [{transform_indices = @transform_0, window_bounds = array<i64: 8, 8, 16>}, {transform_indices = @transform_1, window_bounds = array<i64: 8, 1>}, {pipeline_mode = #tpu.pipeline_mode<synchronous>, transform_indices = @transform_2, window_bounds = array<i64: 1, 16>}, {pipeline_mode = #tpu.pipeline_mode<synchronous>, transform_indices = @transform_3, window_bounds = array<i64: 1, 1>}, {pipeline_mode = #tpu.pipeline_mode<synchronous>, transform_indices = @transform_4, window_bounds = array<i64: 16, 32>}, {pipeline_mode = #tpu.pipeline_mode<synchronous>, transform_indices = @transform_5, window_bounds = array<i64: 1, 32>}, {transform_indices = @transform_6, window_bounds = array<i64: 8, 32>}]} {
    %c0 = arith.constant 0 : index
    %c0_0 = arith.constant 0 : index
    %c0_1 = arith.constant 0 : index
    %0 = vector.load %arg1[%c0, %c0_0, %c0_1] : memref<8x8x16xf32, #tpu.memory_space<vmem>>, vector<8x8x16xf32>
    %c0_2 = arith.constant 0 : index
    %c0_3 = arith.constant 0 : index
    %1 = vector.load %arg3[%c0_2, %c0_3] : memref<1x16xf32, #tpu.memory_space<vmem>>, vector<1x16xf32>
    %2 = vector.shape_cast %1 : vector<1x16xf32> to vector<1x1x16xf32>
    %3 = vector.broadcast %2 : vector<1x1x16xf32> to vector<8x8x16xf32>
    %4 = arith.mulf %0, %3 : vector<8x8x16xf32>
    %cst = arith.constant dense<0.000000e+00> : vector<8x8xf32>
    %5 = vector.multi_reduction <add>, %4, %cst [2] : vector<8x8x16xf32> to vector<8x8xf32>
    %c0_4 = arith.constant 0 : index
    %c0_5 = arith.constant 0 : index
    %6 = vector.load %arg4[%c0_4, %c0_5] : memref<1x1xf32, #tpu.memory_space<vmem>>, vector<1x1xf32>
    %7 = vector.broadcast %6 : vector<1x1xf32> to vector<8x8xf32>
    %8 = arith.addf %5, %7 : vector<8x8xf32>
    %cst_6 = arith.constant 0.000000e+00 : f32
    %9 = vector.broadcast %cst_6 : f32 to vector<8x8xf32>
    %10 = arith.subf %9, %8 : vector<8x8xf32>
    %11 = math.exp %10 : vector<8x8xf32>
    %cst_7 = arith.constant 1.000000e+00 : f32
    %12 = vector.broadcast %cst_7 : f32 to vector<8x8xf32>
    %13 = arith.addf %12, %11 : vector<8x8xf32>
    %cst_8 = arith.constant 1.000000e+00 : f32
    %14 = vector.broadcast %cst_8 : f32 to vector<8x8xf32>
    %15 = arith.divf %14, %13 : vector<8x8xf32>
    %c0_9 = arith.constant 0 : index
    %c0_10 = arith.constant 0 : index
    %16 = vector.load %arg2[%c0_9, %c0_10] : memref<8x1xf32, #tpu.memory_space<vmem>>, vector<8x1xf32>
    %17 = tpu.iota {dimensions = array<i32: 1>} : vector<8x8xi32>
    %18 = arith.sitofp %17 : vector<8x8xi32> to vector<8x8xf32>
    %19 = vector.broadcast %16 : vector<8x1xf32> to vector<8x8xf32>
    %20 = arith.cmpf olt, %18, %19 : vector<8x8xf32>
    %21 = arith.extui %20 : vector<8x8xi1> to vector<8x8xi32>
    %22 = arith.sitofp %21 : vector<8x8xi32> to vector<8x8xf32>
    %23 = arith.mulf %15, %22 : vector<8x8xf32>
    %cst_11 = arith.constant 1.000000e+00 : f32
    %24 = vector.broadcast %cst_11 : f32 to vector<8x1xf32>
    %25 = arith.divf %24, %16 : vector<8x1xf32>
    %26 = vector.broadcast %25 : vector<8x1xf32> to vector<8x8xf32>
    %27 = arith.mulf %23, %26 : vector<8x8xf32>
    %28 = vector.shape_cast %27 : vector<8x8xf32> to vector<8x8x1xf32>
    %29 = vector.broadcast %28 : vector<8x8x1xf32> to vector<8x8x16xf32>
    %30 = arith.mulf %0, %29 : vector<8x8x16xf32>
    %cst_12 = arith.constant dense<0.000000e+00> : vector<8x16xf32>
    %31 = vector.multi_reduction <add>, %30, %cst_12 [1] : vector<8x8x16xf32> to vector<8x16xf32>
    %c0_13 = arith.constant 0 : index
    %c0_14 = arith.constant 0 : index
    %32 = vector.load %arg5[%c0_13, %c0_14] : memref<16x32xf32, #tpu.memory_space<vmem>>, vector<16x32xf32>
    %cst_15 = arith.constant dense<0.000000e+00> : vector<8x32xf32>
    %33 = tpu.matmul %31, %32, %cst_15 {dimension_numbers = #tpu.dot_dimension_numbers<[1], [0], [0], [1], [0, 0, 1, 1], [], []>} : vector<8x16xf32>, vector<16x32xf32>, vector<8x32xf32> -> vector<8x32xf32>
    %c0_16 = arith.constant 0 : index
    %c0_17 = arith.constant 0 : index
    %34 = vector.load %arg6[%c0_16, %c0_17] : memref<1x32xf32, #tpu.memory_space<vmem>>, vector<1x32xf32>
    %35 = vector.broadcast %34 : vector<1x32xf32> to vector<8x32xf32>
    %36 = arith.addf %33, %35 : vector<8x32xf32>
    %c0_18 = arith.constant 0 : index
    %c0_19 = arith.constant 0 : index
    %37 = vector.load %arg7[%c0_18, %c0_19] : memref<8x32xf32, #tpu.memory_space<vmem>>, vector<8x32xf32>
    tpu.vector_store %arg7[%c0_18, %c0_19], %36 {strides = array<i32>} : memref<8x32xf32, #tpu.memory_space<vmem>>, vector<8x32xf32>,
    return
  }
  func.func @transform_0(%arg0: i32) -> (i32, i32, i32) {
    %c0_i32 = arith.constant 0 : i32
    %c0_i32_0 = arith.constant 0 : i32
    %c0_i32_1 = arith.constant 0 : i32
    return %arg0, %c0_i32, %c0_i32_0 : i32, i32, i32
  }
  func.func @transform_1(%arg0: i32) -> (i32, i32) {
    %c0_i32 = arith.constant 0 : i32
    %c0_i32_0 = arith.constant 0 : i32
    return %arg0, %c0_i32 : i32, i32
  }
  func.func @transform_2(%arg0: i32) -> (i32, i32) {
    %c0_i32 = arith.constant 0 : i32
    %c0_i32_0 = arith.constant 0 : i32
    %c0_i32_1 = arith.constant 0 : i32
    return %c0_i32, %c0_i32_0 : i32, i32
  }
  func.func @transform_3(%arg0: i32) -> (i32, i32) {
    %c0_i32 = arith.constant 0 : i32
    %c0_i32_0 = arith.constant 0 : i32
    %c0_i32_1 = arith.constant 0 : i32
    return %c0_i32, %c0_i32_0 : i32, i32
  }
  func.func @transform_4(%arg0: i32) -> (i32, i32) {
    %c0_i32 = arith.constant 0 : i32
    %c0_i32_0 = arith.constant 0 : i32
    %c0_i32_1 = arith.constant 0 : i32
    return %c0_i32, %c0_i32_0 : i32, i32
  }
  func.func @transform_5(%arg0: i32) -> (i32, i32) {
    %c0_i32 = arith.constant 0 : i32
    %c0_i32_0 = arith.constant 0 : i32
    %c0_i32_1 = arith.constant 0 : i32
    return %c0_i32, %c0_i32_0 : i32, i32
  }
  func.func @transform_6(%arg0: i32) -> (i32, i32) {
    %c0_i32 = arith.constant 0 : i32
    %c0_i32_0 = arith.constant 0 : i32
    return %arg0, %c0_i32 : i32, i32
  }
}

</mosaic_0001>

<bundles_post_ra>
// kernel: pooling_layer.1
= control target key start
LH: loop header
LB: loop body
LE: loop exit
PB: predicated region body
PF: predicated region fallthrough
CT: control target
= control target key end

     0   :  { %v545_v0 = vmov 0   ;;  %vm48_vm0 = vcmask 130048   ;;  %v546_v7 = vmov 0.0   ;;  %v140_v31 = vlaneseq  ;;  %s723_s1 = inlined_call_operand.vmem [shape: f32[8,1], index: 1, kind: input, shape index: {}]   ;;  %s724_s0 = inlined_call_operand.vmem [shape: f32[8,8,16], index: 0, kind: input, shape index: {}]   ;;  %s725_s2 = inlined_call_operand.vmem [shape: f32[1,16], index: 2, kind: input, shape index: {}]   ;;  %s726_s3 = inlined_call_operand.<no memory space> [shape: f32[1,1], index: 3, kind: input, shape index: {}]   ;;  %s727_s4 = inlined_call_operand.vmem [shape: f32[16,32], index: 4, kind: input, shape index: {}]   ;;  %s728_s5 = inlined_call_operand.vmem [shape: f32[1,32], index: 5, kind: input, shape index: {}]   ;;  %s729_s6 = inlined_call_operand.vmem [shape: f32[8,32], index: 6, kind: output, shape index: {}]  }
   0x1   :  { %509 = vset.pattern.permute.xlu0 %v545_v0  ;;  %v139_v1 = vld [vmem:[%s723_s1] sm:$0xff]  ;;  %v589_v2 = vld [vmem:[%s724_s0 + $0x8] sm:$0xff]  ;;  %510 = vset.pattern.permute.xlu1 %v545_v0  ;;  %v11_v4 = vstv %s726_s3  ;;  %v601_v6 = vld [vmem:[%s724_s0 + $0x10] sm:$0xff]  ;;  %vm547_vm2 = vmmov 0   ;;  %vm399_vm3 = vcmask 1041409   ;;  %vm401_vm4 = vcmask 1042434  }
   0x2   :  { %v491_v3 = vld [vmem:[%s725_s2] ss:$0 sm:$0xff]  ;;  %145 = vperm.xlu0 %509, %v139_v1   ;;  %12 = vst [vmem:[#allocation2] sm:$0x1] %v11_v4  ;;  %499 = vmatprep.subr.mxu0 %v546_v7  ;;  %v608_v9 = vld [vmem:[%s724_s0 + $0x18] sm:$0xff]  ;;  %v623_v16 = vld [vmem:[%s724_s0 + $0x28] sm:$0xff]  ;;  %511 = vrcp.f32 %v139_v1 }
   0x3   :  { %v41_v5 = vmul.f32 %v491_v3, %v589_v2  ;;  %v42_v8 = vmul.f32 %v491_v3, %v601_v6  ;;  %v43_v12 = vmul.f32 %v491_v3, %v608_v9  ;;  %v616_v13 = vld [vmem:[%s724_s0 + $0x20] sm:$0xff]  ;;  %v45_v18 = vmul.f32 %v491_v3, %v623_v16  ;;  %v630_v19 = vld [vmem:[%s724_s0 + $0x30] sm:$0xff]  ;;  %v637_v22 = vld [vmem:[%s724_s0 + $0x38] sm:$0xff]  ;;  %503 = vmatprep.mubr.msk.f32.mxu0 %vm547_vm2, %v546_v7 }
   0x4   :  { %v44_v15 = vmul.f32 %v491_v3, %v616_v13  ;;  %v46_v21 = vmul.f32 %v491_v3, %v630_v19  ;;  %v47_v24 = vmul.f32 %v491_v3, %v637_v22  ;;  %v644_v25 = vld [vmem:[%s724_s0] sm:$0xff]  ;;  %v141_v32 = vand.u32 127, %v140_v31 }
   0x5   :  { %v52_v10 = vsel %vm48_vm0, %v41_v5, 0.0  ;;  %v55_v11 = vsel %vm48_vm0, %v42_v8, 0.0  ;;  %v58_v14 = vsel %vm48_vm0, %v43_v12, 0.0  ;;  %v64_v20 = vsel %vm48_vm0, %v45_v18, 0.0 }
   0x6   :  { %53 = vadd.xlane.f32.xlu1 %v52_v10  ;;  %v61_v17 = vsel %vm48_vm0, %v44_v15, 0.0  ;;  %v67_v23 = vsel %vm48_vm0, %v46_v21, 0.0  ;;  %v40_v26 = vmul.f32 %v491_v3, %v644_v25  ;;  %v70_v27 = vsel %vm48_vm0, %v47_v24, 0.0 }
   0x7   :  { %v649_v33 = vshrl.u32 %v140_v31, 7  ;;  %v142_v34 = vcvt.s32.f32 %v141_v32  ;;  %vm403_vm5 = vcmask 1043459   ;;  %vm405_vm6 = vcmask 1044484  }
   0x8   :  { %v49_v28 = vsel %vm48_vm0, %v40_v26, 0.0  ;;  %vm407_vm7 = vcmask 1045509   ;;  %vm409_vm8 = vcmask 1046534   ;;  %vm411_vm9 = vcmask 1047559  }
   0x9   :  { %v492_v29 = vld [vmem:[#allocation2] ss:$0 sm:$0xff]  ;;  %v154_v35 = vsub.s32 0, %v649_v33  ;;  %v175_v36 = vsub.s32 3, %v649_v33  ;;  %v161_v41 = vsub.s32 1, %v649_v33  ;;  %v189_v42 = vsub.s32 5, %v649_v33 }
   0xa   :  { %56 = vadd.xlane.f32.xlu1 %v55_v11  ;;  %v168_v45 = vsub.s32 2, %v649_v33  ;;  %v203_v46 = vsub.s32 7, %v649_v33  ;;  %v182_v49 = vsub.s32 4, %v649_v33  ;;  %v196_v51 = vsub.s32 6, %v649_v33 }
   0xb   :  { %vm485_vm10 = vcmask 261120  }
   0xe   :  { %59 = vadd.xlane.f32.xlu1 %v58_v14 }
   0xf   :  { %v512_v30 = vpop.eup %511 }
  0x12   :  { %62 = vadd.xlane.f32.xlu1 %v61_v17 }
  0x16   :  { %65 = vadd.xlane.f32.xlu1 %v64_v20 }
  0x1a   :  { %68 = vadd.xlane.f32.xlu1 %v67_v23 }
  0x1e   :  { %71 = vadd.xlane.f32.xlu1 %v70_v27 }
  0x21   :  { %50 = vadd.xlane.f32.xlu0 %v49_v28 }
  0x2f   :  { %80 = vperm.xlu1 %510, %v492_v29  }
  0x37   :  { %228 = vperm.xlu0 %509, %v512_v30  }
  0x7d   :  { %v146_v37 = vpop.permute.xlu0 %145 }
  0x7e   :  { %vm148_vm1 = vcmp.lt.f32.partialorder %v142_v34, %v146_v37 }
  0x7f   :  { %v493_v38 = vsel %vm148_vm1, 1.0, %v546_v7 }
  0x80   :  { %v155_v39 = vrot.slane %v493_v38, %v154_v35  ;;  %v176_v40 = vrot.slane %v493_v38, %v175_v36  ;;  %v162_v43 = vrot.slane %v493_v38, %v161_v41  ;;  %v190_v44 = vrot.slane %v493_v38, %v189_v42 }
  0x81   :  { %v169_v47 = vrot.slane %v493_v38, %v168_v45  ;;  %v204_v48 = vrot.slane %v493_v38, %v203_v46  ;;  %v183_v50 = vrot.slane %v493_v38, %v182_v49  ;;  %v197_v52 = vrot.slane %v493_v38, %v196_v51 }
  0x82   :  { %157 = vbcast.lane.b32.xlu1 %v155_v39, 256  ;;  %178 = vbcast.lane.b32.xlu0 %v176_v40, 256 }
  0x86   :  { %164 = vbcast.lane.b32.xlu1 %v162_v43, 256  ;;  %192 = vbcast.lane.b32.xlu0 %v190_v44, 256 }
  0x8a   :  { %171 = vbcast.lane.b32.xlu1 %v169_v47, 256  ;;  %206 = vbcast.lane.b32.xlu0 %v204_v48, 256 }
  0x8e   :  { %185 = vbcast.lane.b32.xlu1 %v183_v50, 256 }
  0x8f   :  { %v54_v53 = vpop.xlane.xlu1 %53 }
  0x92   :  { %199 = vbcast.lane.b32.xlu1 %v197_v52, 256 }
  0x93   :  { %v57_v54 = vpop.xlane.xlu1 %56 }
  0x97   :  { %v60_v55 = vpop.xlane.xlu1 %59 }
  0x9b   :  { %v63_v56 = vpop.xlane.xlu1 %62 }
  0x9f   :  { %v66_v57 = vpop.xlane.xlu1 %65 }
  0xa3   :  { %v69_v58 = vpop.xlane.xlu1 %68 }
  0xa7   :  { %v72_v59 = vpop.xlane.xlu1 %71 }
  0xaa   :  { %v51_v60 = vpop.xlane.xlu0 %50 }
  0xab   :  { %v81_v61 = vpop.permute.xlu1 %80 }
  0xac   :  { %v83_v62 = vadd.f32 %v81_v61, %v51_v60  ;;  %v84_v0 = vadd.f32 %v81_v61, %v54_v53  ;;  %v86_v1 = vadd.f32 %v81_v61, %v60_v55  ;;  %v85_v4 = vadd.f32 %v81_v61, %v57_v54 }
  0xad   :  { %v88_v8 = vadd.f32 %v81_v61, %v66_v57  ;;  %v87_v11 = vadd.f32 %v81_v61, %v63_v56  ;;  %v90_v15 = vadd.f32 %v81_v61, %v72_v59  ;;  %v89_v20 = vadd.f32 %v81_v61, %v69_v58 }
  0xae   :  { %v91_v63 = vsub.f32 0.0, %v83_v62  ;;  %v92_v5 = vsub.f32 0.0, %v84_v0  ;;  %v94_v10 = vsub.f32 0.0, %v86_v1  ;;  %v93_v14 = vsub.f32 0.0, %v85_v4 }
  0xaf   :  { %v96_v18 = vsub.f32 0.0, %v88_v8  ;;  %v95_v23 = vsub.f32 0.0, %v87_v11  ;;  %v98_v26 = vsub.f32 0.0, %v90_v15  ;;  %v97_v28 = vsub.f32 0.0, %v89_v20 }
  0xb0   :  { %v99_v3 = vmul.f32 1.442695, %v91_v63  ;;  %v101_v12 = vmul.f32 1.442695, %v92_v5  ;;  %v105_v17 = vmul.f32 1.442695, %v94_v10 }
  0xb1   :  { %v103_v21 = vmul.f32 1.442695, %v93_v14  ;;  %v109_v24 = vmul.f32 1.442695, %v96_v18  ;;  %v107_v27 = vmul.f32 1.442695, %v95_v23 }
  0xb2   :  { %513 = vpow2.f32 %v99_v3  ;;  %v113_v29 = vmul.f32 1.442695, %v98_v26  ;;  %v111_v31 = vmul.f32 1.442695, %v97_v28  ;;  %v229_v54 = vpop.permute.xlu0 %228 }
  0xb3   :  { %515 = vpow2.f32 %v101_v12  ;;  %v233_v61 = vrot.slane %v229_v54, %v154_v35  ;;  %v237_v3 = vrot.slane %v229_v54, %v161_v41  ;;  %v245_v14 = vrot.slane %v229_v54, %v175_v36 }
  0xb4   :  { %517 = vpow2.f32 %v105_v17  ;;  %v241_v15 = vrot.slane %v229_v54, %v168_v45  ;;  %v253_v26 = vrot.slane %v229_v54, %v189_v42  ;;  %v249_v28 = vrot.slane %v229_v54, %v182_v49  ;;  %v383_v49 = vld [vmem:[%s727_s4 + $0x8] sm:$0xff] }
  0xb5   :  { %519 = vpow2.f32 %v103_v21  ;;  %500 = vmatpush3.msra.mxu0 %v383_v49 }
  0xb6   :  { %521 = vpow2.f32 %v109_v24  ;;  %501 = vmatprep.subr.mxu0 %v546_v7 }
  0xb7   :  { %523 = vpow2.f32 %v107_v27 }
  0xb8   :  { %525 = vpow2.f32 %v113_v29 }
  0xb9   :  { %527 = vpow2.f32 %v111_v31 }
  0xbf   :  { %v514_v30 = vpop.eup %513 }
  0xc0   :  { %v115_v32 = vadd.f32 1.0, %v514_v30  ;;  %v516_v34 = vpop.eup %515 }
  0xc1   :  { %v518_v37 = vpop.eup %517  ;;  %v116_v38 = vadd.f32 1.0, %v516_v34  ;;  %v261_v34 = vrot.slane %v229_v54, %v203_v46 }
  0xc2   :  { %529 = vrcp.f32 %v115_v32  ;;  %v520_v39 = vpop.eup %519  ;;  %v118_v40 = vadd.f32 1.0, %v518_v37 }
  0xc3   :  { %v522_v43 = vpop.eup %521  ;;  %531 = vrcp.f32 %v116_v38  ;;  %v117_v44 = vadd.f32 1.0, %v520_v39  ;;  %v257_v38 = vrot.slane %v229_v54, %v196_v51 }
  0xc4   :  { %v524_v47 = vpop.eup %523  ;;  %533 = vrcp.f32 %v118_v40  ;;  %v120_v48 = vadd.f32 1.0, %v522_v43  ;;  %v382_v40 = vld [vmem:[%s727_s4] sm:$0xff] }
  0xc5   :  { %v526_v50 = vpop.eup %525  ;;  %535 = vrcp.f32 %v117_v44  ;;  %v119_v52 = vadd.f32 1.0, %v524_v47  ;;  %502 = vmatpush3.msra.mxu0 %v382_v40 }
  0xc6   :  { %v528_v53 = vpop.eup %527  ;;  %537 = vrcp.f32 %v120_v48  ;;  %v122_v55 = vadd.f32 1.0, %v526_v50 }
  0xc7   :  { %539 = vrcp.f32 %v119_v52  ;;  %v121_v57 = vadd.f32 1.0, %v528_v53 }
  0xc8   :  { %541 = vrcp.f32 %v122_v55 }
  0xc9   :  { %543 = vrcp.f32 %v121_v57 }
  0xcf   :  { %v530_v56 = vpop.eup %529 }
  0xd0   :  { %v532_v63 = vpop.eup %531 }
  0xd1   :  { %v534_v4 = vpop.eup %533 }
  0xd2   :  { %v536_v11 = vpop.eup %535 }
  0xd3   :  { %v538_v17 = vpop.eup %537 }
  0xd4   :  { %v540_v41 = vpop.eup %539 }
  0xd5   :  { %v542_v36 = vpop.eup %541 }
  0xd6   :  { %v544_v31 = vpop.eup %543 }
  0xf4   :  { %v158_v58 = vpop.permute.xlu1 %157  ;;  %v179_v59 = vpop.permute.xlu0 %178 }
  0xf5   :  { %v216_v60 = vmul.f32 %v530_v56, %v158_v58  ;;  %v219_v8 = vmul.f32 %v534_v4, %v179_v59 }
  0xf7   :  { %v270_v62 = vmul.f32 %v233_v61, %v216_v60  ;;  %v273_v18 = vmul.f32 %v245_v14, %v219_v8 }
  0xf8   :  { %v165_v0 = vpop.permute.xlu1 %164  ;;  %v193_v5 = vpop.permute.xlu0 %192 }
  0xf9   :  { %v217_v1 = vmul.f32 %v532_v63, %v165_v0  ;;  %280 = vperm.xlu1 %510, %v270_v62   ;;  %v221_v20 = vmul.f32 %v538_v17, %v193_v5 }
  0xfb   :  { %v271_v10 = vmul.f32 %v237_v3, %v217_v1  ;;  %v275_v29 = vmul.f32 %v253_v26, %v221_v20 }
  0xfc   :  { %v172_v12 = vpop.permute.xlu1 %171  ;;  %v207_v23 = vpop.permute.xlu0 %206 }
  0xfd   :  { %v218_v35 = vmul.f32 %v536_v11, %v172_v12  ;;  %285 = vperm.xlu0 %509, %v271_v10   ;;  %v223_v45 = vmul.f32 %v542_v36, %v207_v23 }
  0xff   :  { %v272_v21 = vmul.f32 %v241_v15, %v218_v35  ;;  %v277_v42 = vmul.f32 %v261_v34, %v223_v45 }
 0x100   :  { %v186_v24 = vpop.permute.xlu1 %185 }
 0x101   :  { %v220_v27 = vmul.f32 %v540_v41, %v186_v24  ;;  %290 = vperm.xlu1 %510, %v272_v21   ;;  %295 = vperm.xlu0 %509, %v273_v18  }
 0x103   :  { %v274_v30 = vmul.f32 %v249_v28, %v220_v27 }
 0x104   :  { %v200_v32 = vpop.permute.xlu1 %199 }
 0x105   :  { %v222_v37 = vmul.f32 %v544_v31, %v200_v32  ;;  %300 = vperm.xlu1 %510, %v274_v30   ;;  %305 = vperm.xlu0 %509, %v275_v29  }
 0x107   :  { %v276_v39 = vmul.f32 %v257_v38, %v222_v37 }
 0x109   :  { %310 = vperm.xlu1 %510, %v276_v39   ;;  %315 = vperm.xlu0 %509, %v277_v42  }
 0x174   :  { %v281_v33 = vpop.permute.xlu1 %280 }
 0x175   :  { %v318_v46 = vmul.f32 %v281_v33, %v644_v25 }
 0x177   :  { %v326_v51 = vsel %vm48_vm0, %v318_v46, 0.0 }
 0x178   :  { %v327_v43 = vrot.slane %v326_v51, 4  ;;  %v286_v44 = vpop.permute.xlu0 %285 }
 0x179   :  { %v319_v47 = vmul.f32 %v286_v44, %v589_v2 }
 0x17a   :  { %v328_v48 = vadd.f32 %v327_v43, %v326_v51 }
 0x17b   :  { %v333_v50 = vsel %vm48_vm0, %v319_v47, 0.0 }
 0x17c   :  { %v334_v52 = vrot.slane %v333_v50, 4  ;;  %v291_v53 = vpop.permute.xlu1 %290  ;;  %v296_v54 = vpop.permute.xlu0 %295  ;;  %v329_v56 = vrot.slane %v328_v48, 2 }
 0x17d   :  { %v320_v55 = vmul.f32 %v291_v53, %v601_v6  ;;  %v321_v7 = vmul.f32 %v296_v54, %v608_v9 }
 0x17e   :  { %v335_v57 = vadd.f32 %v334_v52, %v333_v50  ;;  %v330_v1 = vadd.f32 %v329_v56, %v328_v48 }
 0x17f   :  { %v340_v25 = vsel %vm48_vm0, %v320_v55, 0.0  ;;  %v347_v58 = vsel %vm48_vm0, %v321_v7, 0.0 }
 0x180   :  { %v336_v59 = vrot.slane %v335_v57, 2  ;;  %v341_v60 = vrot.slane %v340_v25, 4  ;;  %v348_v61 = vrot.slane %v347_v58, 4  ;;  %v301_v2 = vpop.permute.xlu1 %300  ;;  %v306_v62 = vpop.permute.xlu0 %305 }
 0x181   :  { %v322_v63 = vmul.f32 %v301_v2, %v616_v13  ;;  %v323_v0 = vmul.f32 %v306_v62, %v623_v16  ;;  %v331_v16 = vrot.slane %v330_v1, 1 }
 0x182   :  { %v337_v3 = vadd.f32 %v336_v59, %v335_v57  ;;  %v342_v6 = vadd.f32 %v341_v60, %v340_v25  ;;  %v349_v4 = vadd.f32 %v348_v61, %v347_v58  ;;  %v494_v25 = vld [vmem:[%s728_s5] ss:$0 sm:$0xff] }
 0x183   :  { %v354_v9 = vsel %vm48_vm0, %v322_v63, 0.0  ;;  %v361_v5 = vsel %vm48_vm0, %v323_v0, 0.0 }
 0x184   :  { %v338_v8 = vrot.slane %v337_v3, 1  ;;  %v343_v10 = vrot.slane %v342_v6, 2  ;;  %v350_v11 = vrot.slane %v349_v4, 2  ;;  %v355_v12 = vrot.slane %v354_v9, 4  ;;  %v311_v14 = vpop.permute.xlu1 %310  ;;  %v316_v35 = vpop.permute.xlu0 %315 }
 0x185   :  { %v362_v15 = vrot.slane %v361_v5, 4  ;;  %v324_v17 = vmul.f32 %v311_v14, %v630_v19  ;;  %v325_v13 = vmul.f32 %v316_v35, %v637_v22  ;;  %v332_v19 = vadd.f32 %v331_v16, %v330_v1 }
 0x186   :  { %v344_v18 = vadd.f32 %v343_v10, %v342_v6  ;;  %v351_v20 = vadd.f32 %v350_v11, %v349_v4  ;;  %v356_v21 = vadd.f32 %v355_v12, %v354_v9  ;;  %v339_v26 = vadd.f32 %v338_v8, %v337_v3 }
 0x187   :  { %v363_v41 = vadd.f32 %v362_v15, %v361_v5  ;;  %v368_v23 = vsel %vm48_vm0, %v324_v17, 0.0  ;;  %v375_v24 = vsel %vm48_vm0, %v325_v13, 0.0 }
 0x188   :  { %v345_v27 = vrot.slane %v344_v18, 1  ;;  %v352_v28 = vrot.slane %v351_v20, 1  ;;  %v357_v36 = vrot.slane %v356_v21, 2  ;;  %v369_v45 = vrot.slane %v368_v23, 4 }
 0x189   :  { %v364_v29 = vrot.slane %v363_v41, 2  ;;  %v376_v30 = vrot.slane %v375_v24, 4  ;;  %v400_v38 = vsel %vm399_vm3, %v339_v26, %v332_v19 }
 0x18a   :  { %v346_v22 = vadd.f32 %v345_v27, %v344_v18  ;;  %v358_v31 = vadd.f32 %v357_v36, %v356_v21  ;;  %v370_v34 = vadd.f32 %v369_v45, %v368_v23  ;;  %v353_v42 = vadd.f32 %v352_v28, %v351_v20 }
 0x18b   :  { %v365_v32 = vadd.f32 %v364_v29, %v363_v41  ;;  %v377_v37 = vadd.f32 %v376_v30, %v375_v24 }
 0x18c   :  { %v359_v39 = vrot.slane %v358_v31, 1  ;;  %v402_v49 = vsel %vm401_vm4, %v346_v22, %v400_v38  ;;  %v371_v33 = vrot.slane %v370_v34, 2 }
 0x18d   :  { %v366_v40 = vrot.slane %v365_v32, 1  ;;  %v378_v46 = vrot.slane %v377_v37, 2  ;;  %v404_v47 = vsel %vm403_vm5, %v353_v42, %v402_v49 }
 0x18e   :  { %v360_v51 = vadd.f32 %v359_v39, %v358_v31  ;;  %v372_v43 = vadd.f32 %v371_v33, %v370_v34 }
 0x18f   :  { %v379_v44 = vadd.f32 %v378_v46, %v377_v37  ;;  %v367_v48 = vadd.f32 %v366_v40, %v365_v32 }
 0x190   :  { %v373_v50 = vrot.slane %v372_v43, 1  ;;  %v406_v53 = vsel %vm405_vm6, %v360_v51, %v404_v47 }
 0x191   :  { %v380_v52 = vrot.slane %v379_v44, 1  ;;  %v408_v7 = vsel %vm407_vm7, %v367_v48, %v406_v53 }
 0x192   :  { %v374_v54 = vadd.f32 %v373_v50, %v372_v43 }
 0x193   :  { %v381_v55 = vadd.f32 %v380_v52, %v379_v44 }
 0x194   :  { %v410_v56 = vsel %vm409_vm8, %v374_v54, %v408_v7 }
 0x195   :  { %v412_v57 = vsel %vm411_vm9, %v381_v55, %v410_v56 }
 0x196   :  { %504 = vmatmul.mubr.msk.f32.vlgmr.msra.gmra.mxu0 %vm48_vm0, %v412_v57 }
 0x256   :  { %v481_v58 = vpop.f32.mrf.mxu0 }
 0x257   :  { %v482_v59 = vadd.f32 %v494_v25, %v481_v58 }
 0x258   :  { %v505_v60 = vpop.f32.mrf.mxu0 }
 0x259   :  { %486 = vst.msk [vmem:[%s729_s6] sm:$0xff] %vm485_vm10, %v482_v59 }

</bundles_post_ra>
